<compile_context>
chip_gen: v7x
topology: tpu7x:2x2x1
jax: 0.10.0
libtpu: 0.0.40
codegen_flags: <defaults>
</compile_context>

<pallas_src>
import functools

import jax
import jax.numpy as jnp
from jax.experimental import pallas as pl
from jax.experimental.pallas import tpu as pltpu

_LANE = 128
_SUBLANE = 8


def _round_up(v, m):
    return m * ((v + m - 1) // m)


def _fused_gcn_kernel(x_ref, adj_ref, w_ref, b_ref, o_ref, *, meta):
    """All GraphConvolution layers fused; intermediates stay on-chip.

    x_ref:   [N, F_in0]       raw (unpadded) node features, f32
    adj_ref: [N, N]           normalized adjacency, f32
    w_ref:   [K_total, F_pad] row-packed, zero-padded weight slab, bf16
    b_ref:   [L, 1, F_pad]    zero-padded biases, f32
    o_ref:   [N, F_pad]       lane-dense output (wrapper slices valid cols)
    meta:    static tuple of (row_offset, k_pad, f_in, f_out) per layer.
    """
    adj = adj_ref[...]                               # [N, N] f32
    h = x_ref[...]                                   # [N, F_in0] f32
    num_layers = len(meta)
    for l, (off, k_pad, _f_in, _f_out) in enumerate(meta):   # static unroll
        k = min(k_pad, h.shape[1])                   # layer 0 uses raw width
        w = w_ref[off:off + k, :]                    # [k, F_pad] bf16, static slice
        # adj @ (h @ W): bf16 MXU inputs, f32 accumulation.
        hw = jnp.dot(h[:, :k].astype(jnp.bfloat16), w,
                     preferred_element_type=jnp.float32)      # [N, F_pad]
        out = jnp.dot(adj, hw, preferred_element_type=jnp.float32) + b_ref[l]
        if l < num_layers - 1:
            out = jnp.maximum(out, 0.0)              # ReLU on all but last layer
        h = out
    o_ref[...] = h.astype(o_ref.dtype)


def pack_gcn_params(params):
    """One-time packing of (W, b) pairs into kernel operands.

    Returns (w_slab [K_total, F_pad] bf16, b_stack [L, 1, F_pad] f32,
             meta, f_pad, nclass).  Call once at init time, not per forward.
    """
    num_layers = len(params)
    f_pad = _round_up(max(w.shape[1] for (w, _) in params), _LANE)

    offs, k_pads, total = [], [], 0
    for (w, _) in params:
        k = _round_up(w.shape[0], _SUBLANE)
        offs.append(total)
        k_pads.append(k)
        total += k

    w_slab = jnp.zeros((total, f_pad), jnp.bfloat16)
    b_stack = jnp.zeros((num_layers, 1, f_pad), jnp.float32)
    meta = []
    for i, (w, b) in enumerate(params):
        f_in, f_out = w.shape
        w_slab = w_slab.at[offs[i]:offs[i] + f_in, :f_out].set(
            w.astype(jnp.bfloat16))
        b_stack = b_stack.at[i, 0, :f_out].set(b)
        meta.append((offs[i], k_pads[i], f_in, f_out))

    nclass = params[-1][0].shape[1]
    return w_slab, b_stack, tuple(meta), f_pad, nclass


def gcn_forward(x, adj, w_slab, b_stack, *, meta, f_pad, nclass):
    """GCN.forward: relu(gc1) -> relu(gc2) -> relu(gc3) -> gc4 (fused)."""
    n = x.shape[0]
    kernel = functools.partial(_fused_gcn_kernel, meta=meta)
    vmem = pltpu.MemorySpace.VMEM

    # Advisory cost from TRUE per-layer widths (not padded ones).
    flops = sum(2 * n * f_in * f_out + 2 * n * n * f_out
                for (_, _, f_in, f_out) in meta)
    bytes_accessed = (x.size * x.dtype.itemsize
                      + adj.size * adj.dtype.itemsize
                      + w_slab.size * w_slab.dtype.itemsize
                      + b_stack.size * b_stack.dtype.itemsize
                      + n * f_pad * 4)

    out_pad = pl.pallas_call(
        kernel,
        out_shape=jax.ShapeDtypeStruct((n, f_pad), jnp.float32),
        in_specs=[
            pl.BlockSpec(memory_space=vmem),   # x        [N, F_in0]
            pl.BlockSpec(memory_space=vmem),   # adj      [N, N]
            pl.BlockSpec(memory_space=vmem),   # W slab   [K_total, F_pad] bf16
            pl.BlockSpec(memory_space=vmem),   # b stack  [L, 1, F_pad]
        ],
        out_specs=pl.BlockSpec(memory_space=vmem),
        cost_estimate=pl.CostEstimate(
            flops=flops, transcendentals=0, bytes_accessed=bytes_accessed),
    )(x, adj, w_slab, b_stack)

    return out_pad[:, :nclass]


def _init_gc_params(key, f_in, f_out):
    # Kipf GraphConvolution init: uniform(-stdv, stdv), stdv = 1/sqrt(f_out)
    stdv = 1.0 / jnp.sqrt(jnp.float32(f_out))
    kw, kb = jax.random.split(key)
    w = jax.random.uniform(kw, (f_in, f_out), jnp.float32, -stdv, stdv)
    b = jax.random.uniform(kb, (f_out,), jnp.float32, -stdv, stdv)
    return w, b


def _reference(x, adj, params):
    (w1, b1), (w2, b2), (w3, b3), (w4, b4) = params
    h = jax.nn.relu(adj @ (x @ w1) + b1)
    h = jax.nn.relu(adj @ (h @ w2) + b2)
    h = jax.nn.relu(adj @ (h @ w3) + b3)
    return adj @ (h @ w4) + b4


if __name__ == "__main__":
    key = jax.random.PRNGKey(0)

    # Small GCN config: N nodes, feature widths per layer.
    N = 16
    nfeat, nhid1, nhid2, nhid3, nclass = 32, 64, 32, 16, 8

    k_x, k_adj, k1, k2, k3, k4 = jax.random.split(key, 6)

    x = jax.random.normal(k_x, (N, nfeat), jnp.float32)

    # Symmetrically-normalized adjacency with self loops (typical GCN input).
    a = (jax.random.uniform(k_adj, (N, N)) < 0.3).astype(jnp.float32)
    a = jnp.maximum(a, a.T) + jnp.eye(N, dtype=jnp.float32)
    deg = jnp.sum(a, axis=1)
    d_inv_sqrt = 1.0 / jnp.sqrt(deg)
    adj = a * d_inv_sqrt[:, None] * d_inv_sqrt[None, :]

    params = (
        _init_gc_params(k1, nfeat, nhid1),
        _init_gc_params(k2, nhid1, nhid2),
        _init_gc_params(k3, nhid2, nhid3),
        _init_gc_params(k4, nhid3, nclass),
    )

    # One-time packing (hoisted out of the per-call path).
    w_slab, b_stack, meta, f_pad, ncls = pack_gcn_params(params)
    fwd = jax.jit(functools.partial(
        gcn_forward, meta=meta, f_pad=f_pad, nclass=ncls))

    out = fwd(x, adj, w_slab, b_stack)
    out = jax.block_until_ready(out)

    ref = _reference(x, adj, params)
    assert out.shape == (N, nclass)
    # Tolerance accounts for bf16 weights/activations at the MXU input; the
    # f32 reference's default-precision dots also run as bf16 MXU passes, so
    # the observed difference is far below this bound.
    assert jnp.allclose(out, ref, atol=2e-2, rtol=2e-2), "mismatch vs reference"

    print("KERNEL_OK")
</pallas_src>

<mosaic_0001>
module attributes {stable_mosaic.version = 11 : i64} {
  func.func @_fused_gcn_kernel(%arg0: memref<16x32xf32, #tpu.memory_space<vmem>>, %arg1: memref<16x16xf32, #tpu.memory_space<vmem>>, %arg2: memref<144x128xbf16, #tpu.memory_space<vmem>>, %arg3: memref<4x1x128xf32, #tpu.memory_space<vmem>>, %arg4: memref<16x128xf32, #tpu.memory_space<vmem>>) attributes {dimension_semantics = [], scalar_prefetch = 0 : i64, scratch_operands = 0 : i64, tpu.core_type = #tpu.core_type<tc>} {
    %c0 = arith.constant 0 : index
    %c0_0 = arith.constant 0 : index
    %0 = vector.load %arg1[%c0, %c0_0] : memref<16x16xf32, #tpu.memory_space<vmem>>, vector<16x16xf32>
    %c0_1 = arith.constant 0 : index
    %c0_2 = arith.constant 0 : index
    %1 = vector.load %arg0[%c0_1, %c0_2] : memref<16x32xf32, #tpu.memory_space<vmem>>, vector<16x32xf32>
    %c0_3 = arith.constant 0 : index
    %c0_4 = arith.constant 0 : index
    %2 = vector.load %arg2[%c0_3, %c0_4] : memref<144x128xbf16, #tpu.memory_space<vmem>>, vector<32x128xbf16>
    %3 = arith.truncf %1 : vector<16x32xf32> to vector<16x32xbf16>
    %cst = arith.constant dense<0.000000e+00> : vector<16x128xf32>
    %4 = tpu.matmul %3, %2, %cst {dimension_numbers = #tpu.dot_dimension_numbers<[1], [0], [0], [1], [0, 0, 1, 1], [], []>} : vector<16x32xbf16>, vector<32x128xbf16>, vector<16x128xf32> -> vector<16x128xf32>
    %cst_5 = arith.constant dense<0.000000e+00> : vector<16x128xf32>
    %5 = tpu.matmul %0, %4, %cst_5 {dimension_numbers = #tpu.dot_dimension_numbers<[1], [0], [0], [1], [0, 0, 1, 1], [], []>} : vector<16x16xf32>, vector<16x128xf32>, vector<16x128xf32> -> vector<16x128xf32>
    %c0_6 = arith.constant 0 : index
    %c0_7 = arith.constant 0 : index
    %c0_8 = arith.constant 0 : index
    %6 = vector.load %arg3[%c0_6, %c0_7, %c0_8] : memref<4x1x128xf32, #tpu.memory_space<vmem>>, vector<1x1x128xf32>
    %7 = vector.shape_cast %6 : vector<1x1x128xf32> to vector<1x128xf32>
    %8 = vector.broadcast %7 : vector<1x128xf32> to vector<16x128xf32>
    %9 = arith.addf %5, %8 : vector<16x128xf32>
    %cst_9 = arith.constant 0.000000e+00 : f32
    %10 = vector.broadcast %cst_9 : f32 to vector<16x128xf32>
    %11 = arith.maximumf %9, %10 : vector<16x128xf32>
    %c32 = arith.constant 32 : index
    %c0_10 = arith.constant 0 : index
    %12 = vector.load %arg2[%c32, %c0_10] : memref<144x128xbf16, #tpu.memory_space<vmem>>, vector<64x128xbf16>
    %13 = vector.extract_strided_slice %11 {offsets = [0, 0], sizes = [16, 64], strides = [1, 1]} : vector<16x128xf32> to vector<16x64xf32>
    %14 = arith.truncf %13 : vector<16x64xf32> to vector<16x64xbf16>
    %cst_11 = arith.constant dense<0.000000e+00> : vector<16x128xf32>
    %15 = tpu.matmul %14, %12, %cst_11 {dimension_numbers = #tpu.dot_dimension_numbers<[1], [0], [0], [1], [0, 0, 1, 1], [], []>} : vector<16x64xbf16>, vector<64x128xbf16>, vector<16x128xf32> -> vector<16x128xf32>
    %cst_12 = arith.constant dense<0.000000e+00> : vector<16x128xf32>
    %16 = tpu.matmul %0, %15, %cst_12 {dimension_numbers = #tpu.dot_dimension_numbers<[1], [0], [0], [1], [0, 0, 1, 1], [], []>} : vector<16x16xf32>, vector<16x128xf32>, vector<16x128xf32> -> vector<16x128xf32>
    %c1 = arith.constant 1 : index
    %c0_13 = arith.constant 0 : index
    %c0_14 = arith.constant 0 : index
    %17 = vector.load %arg3[%c1, %c0_13, %c0_14] : memref<4x1x128xf32, #tpu.memory_space<vmem>>, vector<1x1x128xf32>
    %18 = vector.shape_cast %17 : vector<1x1x128xf32> to vector<1x128xf32>
    %19 = vector.broadcast %18 : vector<1x128xf32> to vector<16x128xf32>
    %20 = arith.addf %16, %19 : vector<16x128xf32>
    %cst_15 = arith.constant 0.000000e+00 : f32
    %21 = vector.broadcast %cst_15 : f32 to vector<16x128xf32>
    %22 = arith.maximumf %20, %21 : vector<16x128xf32>
    %c96 = arith.constant 96 : index
    %c0_16 = arith.constant 0 : index
    %23 = vector.load %arg2[%c96, %c0_16] : memref<144x128xbf16, #tpu.memory_space<vmem>>, vector<32x128xbf16>
    %24 = vector.extract_strided_slice %22 {offsets = [0, 0], sizes = [16, 32], strides = [1, 1]} : vector<16x128xf32> to vector<16x32xf32>
    %25 = arith.truncf %24 : vector<16x32xf32> to vector<16x32xbf16>
    %cst_17 = arith.constant dense<0.000000e+00> : vector<16x128xf32>
    %26 = tpu.matmul %25, %23, %cst_17 {dimension_numbers = #tpu.dot_dimension_numbers<[1], [0], [0], [1], [0, 0, 1, 1], [], []>} : vector<16x32xbf16>, vector<32x128xbf16>, vector<16x128xf32> -> vector<16x128xf32>
    %cst_18 = arith.constant dense<0.000000e+00> : vector<16x128xf32>
    %27 = tpu.matmul %0, %26, %cst_18 {dimension_numbers = #tpu.dot_dimension_numbers<[1], [0], [0], [1], [0, 0, 1, 1], [], []>} : vector<16x16xf32>, vector<16x128xf32>, vector<16x128xf32> -> vector<16x128xf32>
    %c2 = arith.constant 2 : index
    %c0_19 = arith.constant 0 : index
    %c0_20 = arith.constant 0 : index
    %28 = vector.load %arg3[%c2, %c0_19, %c0_20] : memref<4x1x128xf32, #tpu.memory_space<vmem>>, vector<1x1x128xf32>
    %29 = vector.shape_cast %28 : vector<1x1x128xf32> to vector<1x128xf32>
    %30 = vector.broadcast %29 : vector<1x128xf32> to vector<16x128xf32>
    %31 = arith.addf %27, %30 : vector<16x128xf32>
    %cst_21 = arith.constant 0.000000e+00 : f32
    %32 = vector.broadcast %cst_21 : f32 to vector<16x128xf32>
    %33 = arith.maximumf %31, %32 : vector<16x128xf32>
    %c128 = arith.constant 128 : index
    %c0_22 = arith.constant 0 : index
    %34 = vector.load %arg2[%c128, %c0_22] : memref<144x128xbf16, #tpu.memory_space<vmem>>, vector<16x128xbf16>
    %35 = vector.extract_strided_slice %33 {offsets = [0, 0], sizes = [16, 16], strides = [1, 1]} : vector<16x128xf32> to vector<16x16xf32>
    %36 = arith.truncf %35 : vector<16x16xf32> to vector<16x16xbf16>
    %cst_23 = arith.constant dense<0.000000e+00> : vector<16x128xf32>
    %37 = tpu.matmul %36, %34, %cst_23 {dimension_numbers = #tpu.dot_dimension_numbers<[1], [0], [0], [1], [0, 0, 1, 1], [], []>} : vector<16x16xbf16>, vector<16x128xbf16>, vector<16x128xf32> -> vector<16x128xf32>
    %cst_24 = arith.constant dense<0.000000e+00> : vector<16x128xf32>
    %38 = tpu.matmul %0, %37, %cst_24 {dimension_numbers = #tpu.dot_dimension_numbers<[1], [0], [0], [1], [0, 0, 1, 1], [], []>} : vector<16x16xf32>, vector<16x128xf32>, vector<16x128xf32> -> vector<16x128xf32>
    %c3 = arith.constant 3 : index
    %c0_25 = arith.constant 0 : index
    %c0_26 = arith.constant 0 : index
    %39 = vector.load %arg3[%c3, %c0_25, %c0_26] : memref<4x1x128xf32, #tpu.memory_space<vmem>>, vector<1x1x128xf32>
    %40 = vector.shape_cast %39 : vector<1x1x128xf32> to vector<1x128xf32>
    %41 = vector.broadcast %40 : vector<1x128xf32> to vector<16x128xf32>
    %42 = arith.addf %38, %41 : vector<16x128xf32>
    %c0_27 = arith.constant 0 : index
    %c0_28 = arith.constant 0 : index
    %43 = vector.load %arg4[%c0_27, %c0_28] : memref<16x128xf32, #tpu.memory_space<vmem>>, vector<16x128xf32>
    tpu.vector_store %arg4[%c0_27, %c0_28], %42 {strides = array<i32>} : memref<16x128xf32, #tpu.memory_space<vmem>>, vector<16x128xf32>,
    return
  }
}

</mosaic_0001>

<bundles_post_ra>
// kernel: gcn_forward.1
= control target key start
LH: loop header
LB: loop body
LE: loop exit
PB: predicated region body
PF: predicated region fallthrough
CT: control target
= control target key end

     0   :  { %9 = vsyncpa [#allocation3], 0  ;;  %s1027_s0 = inlined_call_operand.hbm [shape: f32[16,32], index: 0, kind: input, shape index: {}]   ;;  %s1028_s1 = inlined_call_operand.hbm [shape: f32[16,16], index: 1, kind: input, shape index: {}]   ;;  %s1029_s2 = inlined_call_operand.hbm [shape: bf16[144,128], index: 2, kind: input, shape index: {}]   ;;  %s1030_s3 = inlined_call_operand.vmem [shape: f32[4,1,128], index: 3, kind: input, shape index: {}]   ;;  %s1031_s4 = inlined_call_operand.vmem [shape: f32[16,128], index: 4, kind: output, shape index: {}]  }
   0x1   :  { %10 = vsyncpa [#allocation5], 0  ;;  %s892_s15 = smov [#allocation4]   ;;  %s893_s17 = smov [#allocation2]  }
   0x2   :  { %s28_s16 = sshll.u32 %s892_s15, 4  ;;  %s16_s18 = sshll.u32 %s893_s17, 4  ;;  %s29_s16 = int_to_ptr.vmem [resolvable:$true] %s28_s16  ;;  %s926_s18 = int_to_ptr.vmem [resolvable:$true] %s16_s18 }
   0x3   :  { %s822_s21 = scalar_lea.hbm %s1028_s1, 256 }
   0x4   :  { %p823_p0 = scmp.ne.s32.totalorder %s1028_s1, %s822_s21  ;;  %p826_p1 = scmp.lt.u32.totalorder %s822_s21, %s1028_s1 }
   0x6   :  { %p828_p2 = pnand %p826_p1, %p823_p0 }
   0x8   :  { %831 = shalt.err (!%p828_p2)
}
   0x9   :  { %s832_s26 = scalar_lea.vmem %s29_s16, 256  ;;  %p837_p4 = scmp.lt.s32.totalorder %s29_s16, %s29_s16 }
   0xa   :  { %p833_p3 = scmp.ne.s32.totalorder %s29_s16, %s832_s26  ;;  %p838_p5 = scmp.lt.s32.totalorder %s832_s26, %s832_s26 }
   0xc   :  { %p839_p6 = por %p838_p5, %p837_p4 }
   0xe   :  { %p840_p7 = pnand %p839_p6, %p833_p3 }
  0x10   :  { %843 = shalt.err (!%p840_p7)
}
  0x11   :  { %s894_s27 = smov 128   ;;  %s895_s28 = smov 8  }
  0x12   :  { %34 = dma.hbm_to_vmem [thread:$0]  %s1028_s1, 256, %s29_s16, [#allocation5], %s894_s27, %s894_s27, %s895_s28  }
  0x13   :  { %s844_s7 = scalar_lea.hbm %s1027_s0, 256 }
  0x14   :  { %p845_p8 = scmp.ne.s32.totalorder %s1027_s0, %s844_s7  ;;  %p848_p9 = scmp.lt.u32.totalorder %s844_s7, %s1027_s0 }
  0x16   :  { %p850_p10 = pnand %p848_p9, %p845_p8 }
  0x18   :  { %853 = shalt.err (!%p850_p10)
}
  0x19   :  { %s854_s12 = scalar_lea.vmem %s926_s18, 256  ;;  %p859_p12 = scmp.lt.s32.totalorder %s926_s18, %s926_s18 }
  0x1a   :  { %p855_p11 = scmp.ne.s32.totalorder %s926_s18, %s854_s12  ;;  %p860_p13 = scmp.lt.s32.totalorder %s854_s12, %s854_s12 }
  0x1c   :  { %p861_p0 = por %p860_p13, %p859_p12 }
  0x1e   :  { %p862_p1 = pnand %p861_p0, %p855_p11 }
  0x20   :  { %865 = shalt.err (!%p862_p1)
}
  0x21   :  { %22 = dma.hbm_to_vmem [thread:$0]  %s1027_s0, 256, %s926_s18, [#allocation3], %s894_s27, %s894_s27, %s895_s28  }
  0x22   :  { %s896_s14 = smov [#allocation6]   ;;  %s866_s19 = scalar_lea.hbm %s1029_s2, 1152 }
  0x23   :  { %s40_s15 = sshll.u32 %s896_s14, 4  ;;  %p867_p2 = scmp.ne.s32.totalorder %s1029_s2, %s866_s19  ;;  %s41_s15 = int_to_ptr.vmem [resolvable:$true] %s40_s15 }
  0x24   :  { %p870_p3 = scmp.lt.u32.totalorder %s866_s19, %s1029_s2 }
  0x26   :  { %p872_p4 = pnand %p870_p3, %p867_p2 }
  0x28   :  { %875 = shalt.err (!%p872_p4)
}
  0x29   :  { %s876_s24 = scalar_lea.vmem %s41_s15, 1152  ;;  %p881_p6 = scmp.lt.s32.totalorder %s41_s15, %s41_s15 }
  0x2a   :  { %p877_p5 = scmp.ne.s32.totalorder %s41_s15, %s876_s24  ;;  %p882_p7 = scmp.lt.s32.totalorder %s876_s24, %s876_s24 }
  0x2c   :  { %p883_p8 = por %p882_p7, %p881_p6 }
  0x2e   :  { %p884_p9 = pnand %p883_p8, %p877_p5 }
  0x30   :  { %887 = shalt.err (!%p884_p9)
}
  0x31   :  { %s897_s0 = smov 64   ;;  %s898_s18 = smov 4  }
  0x32   :  { %46 = dma.hbm_to_vmem [thread:$0]  %s1029_s2, 1152, %s41_s15, [#allocation5], %s897_s0, %s897_s0, %s898_s18  }
  0x33   :  { %888 = dma.done.wait [#allocation3], 256  }
  0x34   :  { %889 = vsyncadd [#allocation3], 4294967040 }
  0x35   :  { %890 = dma.done.wait [#allocation5], 1408  }
  0x36   :  { %891 = vsyncadd [#allocation5], 4294965888  ;;  %v899_v0 = vmov 0.0   ;;  %vm900_vm0 = vmmov 0   ;;  %v813_v1 = vld [vmem:[#allocation6] sm:$0xff]   ;;  %v814_v2 = vld [vmem:[#allocation6 + $0x8] sm:$0xff]  }
  0x37   :  { %726 = vmatprep.subr.bf16.mxu0 %v899_v0  ;;  %730 = vmatprep.mubr.msk.bf16.mxu0 %vm900_vm0, %v899_v0  ;;  %v61_v3 = vld [vmem:[#allocation2] sm:$0xff]  ;;  %v62_v4 = vld [vmem:[#allocation2 + $0x8] sm:$0xff]  ;;  %vm80_vm1 = vcmask 261120   ;;  %v974_v6 = vld [vmem:[#allocation4] sm:$0xff]  ;;  %vm132_vm2 = vcmask 130048   ;;  %vm249_vm3 = vcmask 523264  }
  0x38   :  { %727 = vmatpush3.bf16.msra.mxu0 %v813_v1  ;;  %v67_v5 = vpack.c.bf16 %v62_v4, %v61_v3  ;;  %738 = vmatprep.mubr.msk.f32.mxu1 %vm132_vm2, %v974_v6  ;;  %v980_v12 = vld [vmem:[#allocation4 + $0x8] sm:$0xff]  ;;  %v815_v13 = vld [vmem:[#allocation6 + $0x10] sm:$0xff]   ;;  %v817_v15 = vld [vmem:[#allocation6 + $0x20] sm:$0xff]  }
  0x39   :  { %728 = vmatprep.subr.bf16.mxu0 %v899_v0  ;;  %v816_v14 = vld [vmem:[#allocation6 + $0x18] sm:$0xff]   ;;  %v818_v16 = vld [vmem:[#allocation6 + $0x28] sm:$0xff]   ;;  %v672_v17 = vld [vmem:[%s1030_s3] ss:$0 sm:$0xff] }
  0x3a   :  { %v819_v30 = vld [vmem:[#allocation6 + $0x30] sm:$0xff]   ;;  %v820_v31 = vld [vmem:[#allocation6 + $0x38] sm:$0xff]   ;;  %v681_v32 = vld [vmem:[%s1030_s3 + $0x1] ss:$0 sm:$0xff] }
  0x3b   :  { %v821_v45 = vld [vmem:[#allocation6 + $0x40] sm:$0xff]  }
  0x3c   :  { %729 = vmatpush3.bf16.msra.mxu0 %v814_v2  ;;  %v688_v46 = vld [vmem:[%s1030_s3 + $0x2] ss:$0 sm:$0xff]  ;;  %v694_v59 = vld [vmem:[%s1030_s3 + $0x3] ss:$0 sm:$0xff] }
  0x3f   :  { %731 = vmatmul.mubr.msk.bf16.vlgmr.msra.gmra.mrb[0].mxu0 %vm80_vm1, %v67_v5 }
  0x40   :  { %757 = vmatprep.mubr.msk.f32.mxu0 %vm132_vm2, %v974_v6 }
 0x112   :  { %v118_v7 = vpop.f32.mrb[0].mxu0 }
 0x113   :  { %v732_v8 = vpop.f32.mrb[1].mxu0 }
 0x114   :  { %v121_v9 = vpop.f32.mrb[2].mxu0 }
 0x115   :  { %v788_v10 = vpack.c.bf16 %v121_v9, %v118_v7  ;;  %v733_v11 = vpop.f32.mrb[3].mxu0 }
 0x117   :  { %789 = vmatprep.subr.bf16.mxu1 %v788_v10 }
 0x118   :  { %791 = vmatpush3.bf16.msra.mxu1 %v788_v10 }
 0x119   :  { %741 = vmatprep.subr.bf16.mxu1 %v899_v0 }
 0x11b   :  { %739 = vmatmul.mubr.msk.f32.vlgmr.msra.gmra.mrb[0].mxu1 %vm132_vm2, %v980_v12 }
 0x11c   :  { %742 = vmatpush3.bf16.msra.mxu1 %v815_v13  ;;  %749 = vmatprep.mubr.msk.bf16.mxu1 %vm900_vm0, %v899_v0 }
 0x11d   :  { %743 = vmatprep.subr.bf16.mxu1 %v899_v0 }
 0x120   :  { %744 = vmatpush3.bf16.msra.mxu1 %v816_v14 }
 0x121   :  { %745 = vmatprep.subr.bf16.mxu1 %v899_v0 }
 0x124   :  { %746 = vmatpush3.bf16.msra.mxu1 %v817_v15 }
 0x125   :  { %747 = vmatprep.subr.bf16.mxu1 %v899_v0 }
 0x128   :  { %748 = vmatpush3.bf16.msra.mxu1 %v818_v16 }
 0x1ee   :  { %v740_v18 = vpop.f32.mrb[0].mxu1 }
 0x1ef   :  { %v211_v19 = vadd.f32 %v740_v18, %v672_v17  ;;  %v205_v20 = vpop.f32.mrb[1].mxu1 }
 0x1f0   :  { %v206_v21 = vadd.f32 %v672_v17, %v205_v20 }
 0x1f1   :  { %v215_v22 = vmax.f32 %v211_v19, 0.0 }
 0x1f2   :  { %v214_v23 = vmax.f32 %v206_v21, 0.0 }
 0x1f4   :  { %v224_v24 = vpack.c.bf16 %v215_v22, %v214_v23 }
 0x1f6   :  { %750 = vmatmul.mubr.msk.bf16.vlgmr.msra.gmra.mrb[4].mxu1 %vm249_vm3, %v224_v24 }
 0x1f7   :  { %772 = vmatprep.mubr.msk.f32.mxu1 %vm132_vm2, %v974_v6 }
 0x2c9   :  { %v287_v25 = vpop.f32.mrb[4].mxu1 }
 0x2ca   :  { %v751_v26 = vpop.f32.mrb[5].mxu1 }
 0x2cb   :  { %v290_v27 = vpop.f32.mrb[6].mxu1 }
 0x2cc   :  { %v792_v28 = vpack.c.bf16 %v290_v27, %v287_v25  ;;  %v752_v29 = vpop.f32.mrb[7].mxu1 }
 0x2ce   :  { %793 = vmatprep.subr.bf16.mxu0 %v792_v28 }
 0x2cf   :  { %795 = vmatpush3.bf16.msra.mxu0 %v792_v28 }
 0x2d0   :  { %760 = vmatprep.subr.bf16.mxu0 %v899_v0 }
 0x2d2   :  { %758 = vmatmul.mubr.msk.f32.vlgmr.msra.gmra.mrb[4].mxu0 %vm132_vm2, %v980_v12 }
 0x2d3   :  { %764 = vmatprep.mubr.msk.bf16.mxu0 %vm900_vm0, %v899_v0  ;;  %761 = vmatpush3.bf16.msra.mxu0 %v819_v30 }
 0x2d4   :  { %762 = vmatprep.subr.bf16.mxu0 %v899_v0 }
 0x2d7   :  { %763 = vmatpush3.bf16.msra.mxu0 %v820_v31 }
 0x2d8   :  { %775 = vmatprep.subr.bf16.mxu0 %v899_v0 }
 0x3a5   :  { %v759_v33 = vpop.f32.mrb[4].mxu0 }
 0x3a6   :  { %v374_v34 = vadd.f32 %v759_v33, %v681_v32  ;;  %v368_v35 = vpop.f32.mrb[5].mxu0 }
 0x3a7   :  { %v369_v36 = vadd.f32 %v681_v32, %v368_v35 }
 0x3a8   :  { %v378_v37 = vmax.f32 %v374_v34, 0.0 }
 0x3a9   :  { %v377_v38 = vmax.f32 %v369_v36, 0.0 }
 0x3ab   :  { %v383_v39 = vpack.c.bf16 %v378_v37, %v377_v38 }
 0x3ad   :  { %765 = vmatmul.mubr.msk.bf16.vlgmr.msra.gmra.mrb[8].mxu0 %vm80_vm1, %v383_v39 }
 0x3ae   :  { %777 = vmatprep.mubr.msk.bf16.mxu0 %vm900_vm0, %v899_v0  ;;  %776 = vmatpush3.bf16.msra.mxu0 %v821_v45 }
 0x480   :  { %v433_v40 = vpop.f32.mrb[8].mxu0 }
 0x481   :  { %v766_v41 = vpop.f32.mrb[9].mxu0 }
 0x482   :  { %v436_v42 = vpop.f32.mrb[10].mxu0 }
 0x483   :  { %v796_v43 = vpack.c.bf16 %v436_v42, %v433_v40  ;;  %v767_v44 = vpop.f32.mrb[11].mxu0 }
 0x485   :  { %797 = vmatprep.subr.bf16.mxu1 %v796_v43 }
 0x486   :  { %799 = vmatpush3.bf16.msra.mxu1 %v796_v43 }
 0x489   :  { %773 = vmatmul.mubr.msk.f32.vlgmr.msra.gmra.mrb[2].mxu1 %vm132_vm2, %v980_v12 }
 0x48a   :  { %785 = vmatprep.mubr.msk.f32.mxu1 %vm132_vm2, %v974_v6 }
 0x55c   :  { %v774_v47 = vpop.f32.mrb[2].mxu1 }
 0x55d   :  { %v520_v48 = vadd.f32 %v774_v47, %v688_v46  ;;  %v514_v49 = vpop.f32.mrb[3].mxu1 }
 0x55e   :  { %v515_v50 = vadd.f32 %v688_v46, %v514_v49 }
 0x55f   :  { %v524_v51 = vmax.f32 %v520_v48, 0.0 }
 0x560   :  { %v523_v52 = vmax.f32 %v515_v50, 0.0 }
 0x562   :  { %v527_v53 = vpack.c.bf16 %v524_v51, %v523_v52 }
 0x564   :  { %778 = vmatmul.mubr.msk.bf16.vlgmr.msra.gmra.mrb[12].mxu0 %vm132_vm2, %v527_v53 }
 0x637   :  { %v571_v54 = vpop.f32.mrb[12].mxu0 }
 0x638   :  { %v779_v55 = vpop.f32.mrb[13].mxu0 }
 0x639   :  { %v574_v56 = vpop.f32.mrb[14].mxu0 }
 0x63a   :  { %v800_v57 = vpack.c.bf16 %v574_v56, %v571_v54  ;;  %v780_v58 = vpop.f32.mrb[15].mxu0 }
 0x63c   :  { %801 = vmatprep.subr.bf16.mxu1 %v800_v57 }
 0x63d   :  { %803 = vmatpush3.bf16.msra.mxu1 %v800_v57 }
 0x640   :  { %786 = vmatmul.mubr.msk.f32.vlgmr.msra.gmra.mrb[8].mxu1 %vm132_vm2, %v980_v12 }
 0x713   :  { %v787_v60 = vpop.f32.mrb[8].mxu1 }
 0x714   :  { %v658_v61 = vadd.f32 %v787_v60, %v694_v59  ;;  %v652_v62 = vpop.f32.mrb[9].mxu1 }
 0x715   :  { %v653_v63 = vadd.f32 %v694_v59, %v652_v62 }
 0x716   :  { %662 = vst [vmem:[%s1031_s4 + $0x8] sm:$0xff] %v658_v61 }
 0x717   :  { %661 = vst [vmem:[%s1031_s4] sm:$0xff] %v653_v63 }
 0x718   :  { %667 = vsyncpa [#allocation3], 1 }
 0x719   :  { %668 = vsyncpa [#allocation5], 1 }

</bundles_post_ra>
